<compile_context>
chip_gen: v7x
topology: tpu7x:2x2x1
jax: 0.10.0
libtpu: 0.0.40
codegen_flags: <defaults>
</compile_context>

<pallas_src>
import functools

import jax
import jax.numpy as jnp
from jax import lax
from jax.experimental import pallas as pl
from jax.experimental.pallas import tpu as pltpu

_MB = 1024 * 1024


# ---------------------------------------------------------------------------
# Kernel
# ---------------------------------------------------------------------------
def attention_kernel(s_ref, enc_ref, wst_ref, wet_ref, v_ref, out_ref,
                     scores_ref, *, src_chunk, compute_dtype, out_seq_major):
    src_len, tb, enc2 = enc_ref.shape
    dec_hid = wst_ref.shape[1]
    n_chunks = src_len // src_chunk

    # Hoisted s-projection: one MXU matmul per batch tile (f32 accumulate).
    #   [tb, dec_hid] @ [dec_hid, dec_hid] -> [tb, dec_hid]
    s_proj = jnp.dot(s_ref[...], wst_ref[...],
                     preferred_element_type=jnp.float32)
    v = v_ref[...].astype(compute_dtype)                          # [1, dec]

    def compute_chunk(row0):
        # enc-projection for one src_len chunk; bounds live f32/bf16
        # intermediates to (src_chunk, tb, dec_hid) so a larger batch tile
        # fits VMEM (important for v7x's 64 MiB VMEM / large src_len).
        enc_chunk = enc_ref[pl.ds(row0, src_chunk)]                # [lc, tb, 2e]
        e_proj = jnp.dot(enc_chunk.reshape(src_chunk * tb, enc2), wet_ref[...],
                         preferred_element_type=jnp.float32)       # [lc*tb, dec]
        # tanh (and *v multiply) in bf16 on v6e/v7x (bf16 EUP/VPU), f32 on v5e.
        energy = jnp.tanh(
            (e_proj.reshape(src_chunk, tb, dec_hid)
             + s_proj[None, :, :]).astype(compute_dtype))          # [lc, tb, dec]
        scores_ref[pl.ds(row0, src_chunk), :] = jnp.sum(
            (energy * v[None, :, :]).astype(jnp.float32), axis=-1)  # [lc, tb]

    if n_chunks == 1:
        compute_chunk(0)
    else:
        def body(c, carry):
            compute_chunk(pl.multiple_of(c * src_chunk, src_chunk))
            return carry
        lax.fori_loop(0, n_chunks, body, 0)

    # Softmax over src_len (axis 0) in f32; divide on the EUP reciprocal slot.
    scores = scores_ref[...]                                       # [src_len, tb]
    m = jnp.max(scores, axis=0, keepdims=True)
    e = jnp.exp(scores - m)
    denom = jnp.sum(e, axis=0, keepdims=True)
    probs = e * pl.reciprocal(denom, approx=True)

    if out_seq_major:
        # Lane-dense stores: last block dim is the batch tile.
        out_ref[...] = probs.astype(out_ref.dtype)                 # [src_len, tb]
    else:
        out_ref[...] = jnp.transpose(probs).astype(out_ref.dtype)  # [tb, src_len]


# ---------------------------------------------------------------------------
# Generation / VMEM heuristics
# ---------------------------------------------------------------------------
def _tpu_generation():
    try:
        kind = jax.devices()[0].device_kind.lower()
    except Exception:
        return 6
    if "v2" in kind or "v3" in kind:
        return 4
    if "7" in kind:
        return 7
    if "v6" in kind or "6e" in kind:
        return 6
    if "v5" in kind or "5e" in kind or "5p" in kind:
        return 5
    if "v4" in kind:
        return 4
    return 6


def _vmem_capacity_bytes(gen):
    try:
        cap = int(pltpu.get_tpu_info().vmem_capacity_bytes)
        if cap > 0:
            return cap
    except Exception:
        pass
    return (64 if gen >= 7 else 128) * _MB


def _footprint_bytes(tb, lc, src_len, enc2, dec_hid, in_itemsize, comp_itemsize,
                     enc_buffers=2):
    """Approximate VMEM footprint of one grid step (all live buffers)."""
    enc_block = src_len * tb * enc2 * in_itemsize        # dominant HBM stream
    s_block = tb * dec_hid * in_itemsize
    out_block = src_len * tb * 4
    weights = (dec_hid * dec_hid + enc2 * dec_hid + dec_hid) * in_itemsize
    scores = src_len * tb * 4                             # f32 scores scratch
    s_proj = tb * dec_hid * 4
    # live per-chunk intermediates: e_proj (f32) + e_proj+s (f32) + energy.
    interm = lc * tb * dec_hid * (4 + 4 + comp_itemsize)
    return (enc_buffers * enc_block
            + 2 * (s_block + out_block + weights)
            + scores + s_proj + interm)


def _choose_tiling(batch_pad, src_len, enc2, dec_hid, in_itemsize,
                   comp_itemsize, gen, budget):
    """Pick (batch tile, src_len chunk) that fits the generation-aware budget."""
    tb_cands = sorted({t for t in (1024, 512, 256, 128, 64, 32, 16, 8, batch_pad)
                       if 0 < t <= batch_pad and batch_pad % t == 0
                       and t % 8 == 0}, reverse=True)
    lc_cands = sorted({c for c in (src_len, 2048, 1024, 512, 256, 128,
                                   64, 32, 16, 8, 4, 2, 1)
                       if 0 < c <= src_len and src_len % c == 0}, reverse=True)

    feasible = []
    for tb in tb_cands:
        for lc in lc_cands:
            if _footprint_bytes(tb, lc, src_len, enc2, dec_hid,
                                in_itemsize, comp_itemsize) <= budget:
                feasible.append((tb, lc))
                break
    if not feasible:
        # Never fall back to the whole batch (VMEM blow-up); take the smallest
        # legal tile / chunk.
        # TODO(synk): for extreme src_len*enc2, add a src_len grid axis with an
        # online (running max/sum) softmax instead of shrinking tiles further.
        return 8, lc_cands[-1]
    if gen >= 7:
        # v7x: keep >= 2 parallel grid steps so both TensorCores get work.
        for tb, lc in feasible:
            if batch_pad // tb >= 2:
                return tb, lc
    # v5e/v6e: single TensorCore -> take the largest tile even if grid == (1,).
    return feasible[0]


# ---------------------------------------------------------------------------
# Wrapper
# ---------------------------------------------------------------------------
def attention_forward(s, enc_output, w_attn, w_v):
    """s: [batch, dec_hid]; enc_output: [src_len, batch, 2*enc_hid];
       w_attn: [dec_hid, 2*enc_hid + dec_hid]; w_v: [1, dec_hid].
       Returns softmax attention weights [batch, src_len] (float32)."""
    src_len, batch, enc2 = enc_output.shape
    dec_hid = s.shape[1]

    gen = _tpu_generation()
    # tanh / energy*v compute dtype: bf16 on v6e/v7x, f32 on v5e and older.
    compute_dtype = jnp.bfloat16 if gen >= 6 else jnp.float32

    # Matmul-input dtype follows enc_output's storage dtype (callers should
    # store enc_output / s / weights in bf16 on v6e/v7x: this kernel is
    # HBM-bound and enc_output is the dominant stream).  Accumulation is f32.
    in_dtype = enc_output.dtype
    s = s.astype(in_dtype)
    # Split the fused attn weight to match torch.cat((s, enc_output), dim=2),
    # pre-transposed so the kernel contracts naturally.
    w_s_t = jnp.transpose(w_attn[:, :dec_hid]).astype(in_dtype)   # [dec, dec]
    w_e_t = jnp.transpose(w_attn[:, dec_hid:]).astype(in_dtype)   # [2e, dec]
    w_v = w_v.astype(in_dtype)                                    # [1, dec]

    # Pad batch to a multiple of 8 (sublane) so every tile keeps its natural
    # (8,128) layout and the grid never collapses to one odd-sized step.
    batch_pad = max(8, -(-batch // 8) * 8)
    if batch_pad != batch:
        s = jnp.pad(s, ((0, batch_pad - batch), (0, 0)))
        enc_output = jnp.pad(enc_output, ((0, 0), (0, batch_pad - batch), (0, 0)))

    in_itemsize = enc_output.dtype.itemsize
    comp_itemsize = 2 if compute_dtype == jnp.bfloat16 else 4

    phys = _vmem_capacity_bytes(gen)
    if gen >= 7:
        phys = min(phys, 64 * _MB)            # per-TensorCore VMEM on v7x
    budget = min(phys // 2, 64 * _MB)         # ~32 MiB v7x, ~64 MiB v5e/v6e
    vmem_limit = min(phys * 3 // 4, 96 * _MB)

    tb, src_chunk = _choose_tiling(batch_pad, src_len, enc2, dec_hid,
                                   in_itemsize, comp_itemsize, gen, budget)
    grid_steps = batch_pad // tb

    # Lane-dense output: emit [src_len, tb] (full-width stores over the batch
    # tile) unless src_len is already a multiple of 128, or tb cannot legally
    # be the last block dim (must be a multiple of 128 or the full batch).
    out_seq_major = (src_len % 128 != 0) and (tb % 128 == 0 or tb == batch_pad)
    if out_seq_major:
        out_shape = jax.ShapeDtypeStruct((src_len, batch_pad), jnp.float32)
        out_spec = pl.BlockSpec((src_len, tb), lambda b: (0, b))
    else:
        out_shape = jax.ShapeDtypeStruct((batch_pad, src_len), jnp.float32)
        out_spec = pl.BlockSpec((tb, src_len), lambda b: (b, 0))

    # enc block DMA: per-row chunk is tb*enc2*itemsize bytes; large tb keeps it
    # well above the ~4 KiB granularity where strided DMA wastes bandwidth.
    enc_spec = pl.BlockSpec((src_len, tb, enc2), lambda b: (0, b, 0))
    if (gen < 7 and grid_steps > 1 and
            _footprint_bytes(tb, src_chunk, src_len, enc2, dec_hid, in_itemsize,
                             comp_itemsize, enc_buffers=3) <= budget):
        # Triple-buffer the dominant enc stream when there is headroom.
        enc_spec = pl.BlockSpec((src_len, tb, enc2), lambda b: (0, b, 0),
                                pipeline_mode=pl.Buffered(3))

    kernel = functools.partial(attention_kernel, src_chunk=src_chunk,
                               compute_dtype=compute_dtype,
                               out_seq_major=out_seq_major)

    out = pl.pallas_call(
        kernel,
        out_shape=out_shape,
        grid_spec=pltpu.PrefetchScalarGridSpec(
            num_scalar_prefetch=0,
            grid=(grid_steps,),
            in_specs=[
                pl.BlockSpec((tb, dec_hid), lambda b: (b, 0)),       # s tile
                enc_spec,                                            # enc tile (natural layout)
                pl.BlockSpec((dec_hid, dec_hid), lambda b: (0, 0)),  # W_s^T (resident)
                pl.BlockSpec((enc2, dec_hid), lambda b: (0, 0)),     # W_e^T (resident)
                pl.BlockSpec((1, dec_hid), lambda b: (0, 0)),        # v (resident)
            ],
            out_specs=out_spec,
            scratch_shapes=[pltpu.VMEM((src_len, tb), jnp.float32)],  # scores
        ),
        compiler_params=pltpu.CompilerParams(
            dimension_semantics=("parallel",),
            vmem_limit_bytes=int(vmem_limit)),
    )(s, enc_output, w_s_t, w_e_t, w_v)

    if out_seq_major:
        out = jnp.transpose(out)             # tiny [src_len, batch_pad] result
    return out[:batch]                       # drop batch padding


def attention_reference(s, enc_output, w_attn, w_v):
    """Pure-JAX mirror of the PyTorch forward, for verification."""
    src_len = enc_output.shape[0]
    s_rep = jnp.repeat(s[:, None, :], src_len, axis=1)          # [B, L, dec]
    enc = jnp.transpose(enc_output, (1, 0, 2))                  # [B, L, 2e]
    cat = jnp.concatenate([s_rep, enc], axis=2)                 # [B, L, 2e+dec]
    energy = jnp.tanh(cat @ w_attn.T)                           # [B, L, dec]
    attention = (energy @ w_v.T)[..., 0]                        # [B, L]
    return jax.nn.softmax(attention, axis=1)


if __name__ == "__main__":
    batch = 2
    src_len = 8
    enc_hid_dim = 16
    dec_hid_dim = 32
    enc2 = enc_hid_dim * 2

    key = jax.random.PRNGKey(0)
    k_s, k_enc, k_wa, k_wv = jax.random.split(key, 4)

    # Module inputs (f32 master copies).
    s_f32 = jax.random.normal(k_s, (batch, dec_hid_dim), dtype=jnp.float32)
    enc_f32 = jax.random.normal(k_enc, (src_len, batch, enc2), dtype=jnp.float32)

    # Deterministic parameter init (nn.Linear-like uniform scale, no bias).
    in_attn = enc2 + dec_hid_dim
    w_attn = jax.random.uniform(
        k_wa, (dec_hid_dim, in_attn), dtype=jnp.float32,
        minval=-1.0 / jnp.sqrt(in_attn), maxval=1.0 / jnp.sqrt(in_attn))
    w_v = jax.random.uniform(
        k_wv, (1, dec_hid_dim), dtype=jnp.float32,
        minval=-1.0 / jnp.sqrt(dec_hid_dim), maxval=1.0 / jnp.sqrt(dec_hid_dim))

    gen = _tpu_generation()
    # Recommended storage contract: bf16 activations on v6e/v7x (mem-bound
    # kernel, halves HBM traffic of the dominant enc stream); f32 on v5e.
    storage_dtype = jnp.bfloat16 if gen >= 6 else jnp.float32
    s = s_f32.astype(storage_dtype)
    enc_output = enc_f32.astype(storage_dtype)

    out = attention_forward(s, enc_output, w_attn, w_v)
    out = jax.block_until_ready(out)

    # Reference in f32 on the same stored values (so the tolerance only covers
    # in-kernel bf16 tanh / bf16 weights / approx reciprocal).
    ref = attention_reference(s.astype(jnp.float32),
                              enc_output.astype(jnp.float32), w_attn, w_v)

    assert out.shape == (batch, src_len)
    tol = 3e-2 if storage_dtype == jnp.bfloat16 else 2e-3
    assert jnp.allclose(out, ref, atol=tol, rtol=tol), (out, ref)
    # Each row is a probability distribution over src_len.
    assert jnp.allclose(jnp.sum(out, axis=1), 1.0, atol=5e-3)

    print("KERNEL_OK")
</pallas_src>

<mosaic_0001>
module attributes {stable_mosaic.version = 11 : i64} {
  func.func @attention_kernel(%arg0: i32, %arg1: memref<8x32xbf16, #tpu.memory_space<vmem>>, %arg2: memref<8x8x32xbf16, #tpu.memory_space<vmem>>, %arg3: memref<32x32xbf16, #tpu.memory_space<vmem>>, %arg4: memref<32x32xbf16, #tpu.memory_space<vmem>>, %arg5: memref<1x32xbf16, #tpu.memory_space<vmem>>, %arg6: memref<8x8xf32, #tpu.memory_space<vmem>>, %arg7: memref<8x8xf32, #tpu.memory_space<vmem>>) attributes {dimension_semantics = [#tpu.dimension_semantics<parallel>], iteration_bounds = array<i64: 1>, scalar_prefetch = 0 : i64, scratch_operands = 1 : i64, tpu.core_type = #tpu.core_type<tc>, window_params = [{transform_indices = @transform_0, window_bounds = array<i64: 8, 32>}, {transform_indices = @transform_1, window_bounds = array<i64: 8, 8, 32>}, {pipeline_mode = #tpu.pipeline_mode<synchronous>, transform_indices = @transform_2, window_bounds = array<i64: 32, 32>}, {pipeline_mode = #tpu.pipeline_mode<synchronous>, transform_indices = @transform_3, window_bounds = array<i64: 32, 32>}, {pipeline_mode = #tpu.pipeline_mode<synchronous>, transform_indices = @transform_4, window_bounds = array<i64: 1, 32>}, {transform_indices = @transform_5, window_bounds = array<i64: 8, 8>}]} {
    %c0 = arith.constant 0 : index
    %c0_0 = arith.constant 0 : index
    %0 = vector.load %arg1[%c0, %c0_0] : memref<8x32xbf16, #tpu.memory_space<vmem>>, vector<8x32xbf16>
    %c0_1 = arith.constant 0 : index
    %c0_2 = arith.constant 0 : index
    %1 = vector.load %arg3[%c0_1, %c0_2] : memref<32x32xbf16, #tpu.memory_space<vmem>>, vector<32x32xbf16>
    %cst = arith.constant dense<0.000000e+00> : vector<8x32xf32>
    %2 = tpu.matmul %0, %1, %cst {dimension_numbers = #tpu.dot_dimension_numbers<[1], [0], [0], [1], [0, 0, 1, 1], [], []>} : vector<8x32xbf16>, vector<32x32xbf16>, vector<8x32xf32> -> vector<8x32xf32>
    %c0_3 = arith.constant 0 : index
    %c0_4 = arith.constant 0 : index
    %3 = vector.load %arg5[%c0_3, %c0_4] : memref<1x32xbf16, #tpu.memory_space<vmem>>, vector<1x32xbf16>
    %c0_5 = arith.constant 0 : index
    %c0_6 = arith.constant 0 : index
    %c0_7 = arith.constant 0 : index
    %4 = vector.load %arg2[%c0_5, %c0_6, %c0_7] : memref<8x8x32xbf16, #tpu.memory_space<vmem>>, vector<8x8x32xbf16>
    %5 = vector.shape_cast %4 : vector<8x8x32xbf16> to vector<64x32xbf16>
    %c0_8 = arith.constant 0 : index
    %c0_9 = arith.constant 0 : index
    %6 = vector.load %arg4[%c0_8, %c0_9] : memref<32x32xbf16, #tpu.memory_space<vmem>>, vector<32x32xbf16>
    %cst_10 = arith.constant dense<0.000000e+00> : vector<64x32xf32>
    %7 = tpu.matmul %5, %6, %cst_10 {dimension_numbers = #tpu.dot_dimension_numbers<[1], [0], [0], [1], [0, 0, 1, 1], [], []>} : vector<64x32xbf16>, vector<32x32xbf16>, vector<64x32xf32> -> vector<64x32xf32>
    %8 = vector.shape_cast %7 : vector<64x32xf32> to vector<8x8x32xf32>
    %9 = vector.shape_cast %2 : vector<8x32xf32> to vector<1x8x32xf32>
    %10 = vector.broadcast %9 : vector<1x8x32xf32> to vector<8x8x32xf32>
    %11 = arith.addf %8, %10 : vector<8x8x32xf32>
    %12 = arith.truncf %11 : vector<8x8x32xf32> to vector<8x8x32xbf16>
    %13 = math.tanh %12 : vector<8x8x32xbf16>
    %14 = vector.shape_cast %3 : vector<1x32xbf16> to vector<1x1x32xbf16>
    %15 = vector.broadcast %14 : vector<1x1x32xbf16> to vector<8x8x32xbf16>
    %16 = arith.mulf %13, %15 : vector<8x8x32xbf16>
    %17 = arith.extf %16 : vector<8x8x32xbf16> to vector<8x8x32xf32>
    %cst_11 = arith.constant dense<0.000000e+00> : vector<8x8xf32>
    %18 = vector.multi_reduction <add>, %17, %cst_11 [2] : vector<8x8x32xf32> to vector<8x8xf32>
    %c0_12 = arith.constant 0 : index
    %c0_13 = arith.constant 0 : index
    %19 = vector.load %arg7[%c0_12, %c0_13] : memref<8x8xf32, #tpu.memory_space<vmem>>, vector<8x8xf32>
    tpu.vector_store %arg7[%c0_12, %c0_13], %18 {strides = array<i32>} : memref<8x8xf32, #tpu.memory_space<vmem>>, vector<8x8xf32>,
    %c0_14 = arith.constant 0 : index
    %c0_15 = arith.constant 0 : index
    %20 = vector.load %arg7[%c0_14, %c0_15] : memref<8x8xf32, #tpu.memory_space<vmem>>, vector<8x8xf32>
    %cst_16 = arith.constant dense<0xFF800000> : vector<8xf32>
    %21 = vector.multi_reduction <maximumf>, %20, %cst_16 [0] : vector<8x8xf32> to vector<8xf32>
    %22 = vector.shape_cast %21 : vector<8xf32> to vector<1x8xf32>
    %23 = vector.broadcast %22 : vector<1x8xf32> to vector<8x8xf32>
    %24 = arith.subf %20, %23 : vector<8x8xf32>
    %25 = math.exp %24 : vector<8x8xf32>
    %cst_17 = arith.constant dense<0.000000e+00> : vector<8xf32>
    %26 = vector.multi_reduction <add>, %25, %cst_17 [0] : vector<8x8xf32> to vector<8xf32>
    %27 = vector.shape_cast %26 : vector<8xf32> to vector<1x8xf32>
    %28 = tpu.reciprocal %27 {approx = true} : vector<1x8xf32> -> vector<1x8xf32>
    %29 = vector.broadcast %28 : vector<1x8xf32> to vector<8x8xf32>
    %30 = arith.mulf %25, %29 : vector<8x8xf32>
    %c0_18 = arith.constant 0 : index
    %c0_19 = arith.constant 0 : index
    %31 = vector.load %arg6[%c0_18, %c0_19] : memref<8x8xf32, #tpu.memory_space<vmem>>, vector<8x8xf32>
    tpu.vector_store %arg6[%c0_18, %c0_19], %30 {strides = array<i32>} : memref<8x8xf32, #tpu.memory_space<vmem>>, vector<8x8xf32>,
    return
  }
  func.func @transform_0(%arg0: i32) -> (i32, i32) {
    %c0_i32 = arith.constant 0 : i32
    %c0_i32_0 = arith.constant 0 : i32
    return %arg0, %c0_i32 : i32, i32
  }
  func.func @transform_1(%arg0: i32) -> (i32, i32, i32) {
    %c0_i32 = arith.constant 0 : i32
    %c0_i32_0 = arith.constant 0 : i32
    %c0_i32_1 = arith.constant 0 : i32
    return %c0_i32, %arg0, %c0_i32_0 : i32, i32, i32
  }
  func.func @transform_2(%arg0: i32) -> (i32, i32) {
    %c0_i32 = arith.constant 0 : i32
    %c0_i32_0 = arith.constant 0 : i32
    %c0_i32_1 = arith.constant 0 : i32
    return %c0_i32, %c0_i32_0 : i32, i32
  }
  func.func @transform_3(%arg0: i32) -> (i32, i32) {
    %c0_i32 = arith.constant 0 : i32
    %c0_i32_0 = arith.constant 0 : i32
    %c0_i32_1 = arith.constant 0 : i32
    return %c0_i32, %c0_i32_0 : i32, i32
  }
  func.func @transform_4(%arg0: i32) -> (i32, i32) {
    %c0_i32 = arith.constant 0 : i32
    %c0_i32_0 = arith.constant 0 : i32
    %c0_i32_1 = arith.constant 0 : i32
    return %c0_i32, %c0_i32_0 : i32, i32
  }
  func.func @transform_5(%arg0: i32) -> (i32, i32) {
    %c0_i32 = arith.constant 0 : i32
    %c0_i32_0 = arith.constant 0 : i32
    return %c0_i32, %arg0 : i32, i32
  }
}

</mosaic_0001>

<bundles_post_ra>
// kernel: tpu_custom_call.1
= control target key start
LH: loop header
LB: loop body
LE: loop exit
PB: predicated region body
PF: predicated region fallthrough
CT: control target
= control target key end

     0   :  { %10 = vsyncpa [#allocation4], 0  ;;  %s805_s0 = inlined_call_operand.hbm [shape: bf16[8,32], index: 0, kind: input, shape index: {}]   ;;  %s806_s1 = inlined_call_operand.hbm [shape: bf16[8,8,32], index: 1, kind: input, shape index: {}]   ;;  %s807_s2 = inlined_call_operand.hbm [shape: bf16[32,32], index: 2, kind: input, shape index: {}]   ;;  %s808_s3 = inlined_call_operand.hbm [shape: bf16[32,32], index: 3, kind: input, shape index: {}]   ;;  %s809_s4 = inlined_call_operand.hbm [shape: bf16[1,32], index: 4, kind: input, shape index: {}]   ;;  %s810_s5 = inlined_call_operand.hbm [shape: f32[8,8], index: 5, kind: output, shape index: {}]  }
   0x1   :  { %11 = vsyncpa [#allocation7], 0 }
   0x2   :  { %12 = vsyncpa [#allocation10], 0 }
   0x3   :  { %13 = vsyncpa [#allocation5], 0  ;;  %s657_s18 = smov [#allocation6]   ;;  %s517_s22 = scalar_lea.hbm %s806_s1, 512 }
   0x4   :  { %s29_s19 = sshll.u32 %s657_s18, 4  ;;  %p518_p0 = scmp.ne.s32.totalorder %s806_s1, %s517_s22  ;;  %s30_s19 = int_to_ptr.vmem [resolvable:$true] %s29_s19 }
   0x5   :  { %p521_p1 = scmp.lt.u32.totalorder %s517_s22, %s806_s1 }
   0x7   :  { %p523_p2 = pnand %p521_p1, %p518_p0 }
   0x9   :  { %526 = shalt.err (!%p523_p2)
}
   0xa   :  { %s527_s27 = scalar_lea.vmem %s30_s19, 512  ;;  %p532_p4 = scmp.lt.s32.totalorder %s30_s19, %s30_s19 }
   0xb   :  { %p528_p3 = scmp.ne.s32.totalorder %s30_s19, %s527_s27  ;;  %p533_p5 = scmp.lt.s32.totalorder %s527_s27, %s527_s27 }
   0xd   :  { %p534_p6 = por %p533_p5, %p532_p4 }
   0xf   :  { %p535_p7 = pnand %p534_p6, %p528_p3 }
  0x11   :  { %538 = shalt.err (!%p535_p7)
}
  0x12   :  { %s658_s28 = smov 64   ;;  %s659_s29 = smov 4  }
  0x13   :  { %35 = dma.hbm_to_vmem [thread:$0]  %s806_s1, 512, %s30_s19, [#allocation7], %s658_s28, %s658_s28, %s659_s29  }
  0x14   :  { %s660_s7 = smov [#allocation9]   ;;  %s661_s9 = smov [#allocation3]  }
  0x15   :  { %s53_s8 = sshll.u32 %s660_s7, 4  ;;  %s20_s10 = sshll.u32 %s661_s9, 4  ;;  %s54_s8 = int_to_ptr.vmem [resolvable:$true] %s53_s8  ;;  %s21_s10 = int_to_ptr.vmem [resolvable:$true] %s20_s10 }
  0x16   :  { %s539_s13 = scalar_lea.hbm %s808_s3, 256 }
  0x17   :  { %p540_p8 = scmp.ne.s32.totalorder %s808_s3, %s539_s13  ;;  %p543_p9 = scmp.lt.u32.totalorder %s539_s13, %s808_s3 }
  0x19   :  { %p545_p10 = pnand %p543_p9, %p540_p8 }
  0x1b   :  { %548 = shalt.err (!%p545_p10)
}
  0x1c   :  { %s549_s1 = scalar_lea.vmem %s54_s8, 256  ;;  %p554_p12 = scmp.lt.s32.totalorder %s54_s8, %s54_s8 }
  0x1d   :  { %p550_p11 = scmp.ne.s32.totalorder %s54_s8, %s549_s1  ;;  %p555_p13 = scmp.lt.s32.totalorder %s549_s1, %s549_s1 }
  0x1f   :  { %p556_p0 = por %p555_p13, %p554_p12 }
  0x21   :  { %p557_p1 = pnand %p556_p0, %p550_p11 }
  0x23   :  { %560 = shalt.err (!%p557_p1)
}
  0x24   :  { %59 = dma.hbm_to_vmem [thread:$0]  %s808_s3, 256, %s54_s8, [#allocation10], %s658_s28, %s658_s28, %s659_s29  }
  0x25   :  { %s561_s22 = scalar_lea.hbm %s805_s0, 64 }
  0x26   :  { %p562_p2 = scmp.ne.s32.totalorder %s805_s0, %s561_s22  ;;  %p565_p3 = scmp.lt.u32.totalorder %s561_s22, %s805_s0 }
  0x28   :  { %p567_p4 = pnand %p565_p3, %p562_p2 }
  0x2a   :  { %570 = shalt.err (!%p567_p4)
}
  0x2b   :  { %s571_s27 = scalar_lea.vmem %s21_s10, 64  ;;  %p576_p6 = scmp.lt.s32.totalorder %s21_s10, %s21_s10 }
  0x2c   :  { %p572_p5 = scmp.ne.s32.totalorder %s21_s10, %s571_s27  ;;  %p577_p7 = scmp.lt.s32.totalorder %s571_s27, %s571_s27 }
  0x2e   :  { %p578_p8 = por %p577_p7, %p576_p6 }
  0x30   :  { %p579_p9 = pnand %p578_p8, %p572_p5 }
  0x32   :  { %582 = shalt.err (!%p579_p9)
}
  0x33   :  { %23 = dma.hbm_to_vmem [thread:$0]  %s805_s0, 64, %s21_s10, [#allocation4]  }
  0x34   :  { %s662_s6 = smov [#allocation8]   ;;  %s663_s8 = smov [#allocation11]  }
  0x35   :  { %s41_s7 = sshll.u32 %s662_s6, 4  ;;  %s66_s9 = sshll.u32 %s663_s8, 4  ;;  %s42_s7 = int_to_ptr.vmem [resolvable:$true] %s41_s7  ;;  %s67_s9 = int_to_ptr.vmem [resolvable:$true] %s66_s9 }
  0x36   :  { %s583_s13 = scalar_lea.hbm %s807_s2, 256 }
  0x37   :  { %p584_p10 = scmp.ne.s32.totalorder %s807_s2, %s583_s13  ;;  %p587_p11 = scmp.lt.u32.totalorder %s583_s13, %s807_s2 }
  0x39   :  { %p589_p12 = pnand %p587_p11, %p584_p10 }
  0x3b   :  { %592 = shalt.err (!%p589_p12)
}
  0x3c   :  { %s593_s0 = scalar_lea.vmem %s42_s7, 256  ;;  %p598_p0 = scmp.lt.s32.totalorder %s42_s7, %s42_s7 }
  0x3d   :  { %p594_p13 = scmp.ne.s32.totalorder %s42_s7, %s593_s0  ;;  %p599_p1 = scmp.lt.s32.totalorder %s593_s0, %s593_s0 }
  0x3f   :  { %p600_p2 = por %p599_p1, %p598_p0 }
  0x41   :  { %p601_p3 = pnand %p600_p2, %p594_p13 }
  0x43   :  { %604 = shalt.err (!%p601_p3)
}
  0x44   :  { %47 = dma.hbm_to_vmem [thread:$0]  %s807_s2, 256, %s42_s7, [#allocation7], %s658_s28, %s658_s28, %s659_s29  }
  0x45   :  { %s605_s20 = scalar_lea.hbm %s809_s4, 16 }
  0x46   :  { %p606_p4 = scmp.ne.s32.totalorder %s809_s4, %s605_s20  ;;  %p609_p5 = scmp.lt.u32.totalorder %s605_s20, %s809_s4 }
  0x48   :  { %p611_p6 = pnand %p609_p5, %p606_p4 }
  0x4a   :  { %614 = shalt.err (!%p611_p6)
}
  0x4b   :  { %s615_s25 = scalar_lea.vmem %s67_s9, 16  ;;  %s619_s26 = scalar_lea.vmem %s67_s9, 32 }
  0x4c   :  { %p616_p7 = scmp.ne.s32.totalorder %s67_s9, %s615_s25  ;;  %p620_p8 = scmp.lt.s32.totalorder %s67_s9, %s67_s9 }
  0x4d   :  { %p621_p9 = scmp.lt.s32.totalorder %s619_s26, %s615_s25 }
  0x4f   :  { %p622_p10 = por %p621_p9, %p620_p8 }
  0x51   :  { %p623_p11 = pnand %p622_p10, %p616_p7 }
  0x53   :  { %626 = shalt.err (!%p623_p11)
}
  0x54   :  { %69 = dma.hbm_to_vmem [thread:$0]  %s809_s4, 16, %s67_s9, [#allocation10]  }
  0x55   :  { %649 = dma.done.wait [#allocation4], 64  }
  0x56   :  { %650 = vsyncadd [#allocation4], 4294967232 }
  0x57   :  { %651 = dma.done.wait [#allocation7], 768  }
  0x58   :  { %652 = vsyncadd [#allocation7], 4294966528 }
  0x59   :  { %653 = dma.done.wait [#allocation10], 272  }
  0x5a   :  { %654 = vsyncadd [#allocation10], 4294967024  ;;  %v664_v0 = vmov 0.0   ;;  %vm665_vm0 = vmmov 0   ;;  %v489_v1 = vld [vmem:[#allocation8] sm:$0xff]   ;;  %v490_v2 = vld [vmem:[#allocation9] sm:$0xff]   ;;  %v296_v10 = vlaneseq }
  0x5b   :  { %459 = vmatprep.subr.bf16.mxu0 %v664_v0  ;;  %463 = vmatprep.mubr.msk.bf16.mxu0 %vm665_vm0, %v664_v0  ;;  %v491_v3 = vld [vmem:[#allocation8 + $0x8] sm:$0xff]   ;;  %v492_v4 = vld [vmem:[#allocation9 + $0x8] sm:$0xff]   ;;  %vm103_vm1 = vcmask 261120   ;;  %v493_v5 = vld [vmem:[#allocation6] sm:$0xff]   ;;  %vm382_vm2 = vcmask 1041409   ;;  %vm384_vm3 = vcmask 1042434  }
  0x5c   :  { %460 = vmatpush3.bf16.msra.mxu0 %v489_v1  ;;  %467 = vmatprep.subr.bf16.mxu1 %v490_v2  ;;  %v86_v6 = vld [vmem:[#allocation3] sm:$0xf]  ;;  %v494_v7 = vld [vmem:[#allocation6 + $0x8] sm:$0xff]   ;;  %v495_v8 = vld [vmem:[#allocation6 + $0x10] sm:$0xff]   ;;  %v297_v11 = vshrl.u32 %v296_v10, 7  ;;  %v349_v12 = vand.u32 127, %v296_v10 }
  0x5d   :  { %461 = vmatprep.subr.bf16.mxu0 %v664_v0  ;;  %468 = vmatpush3.bf16.msra.mxu1 %v490_v2  ;;  %v496_v9 = vld [vmem:[#allocation6 + $0x18] sm:$0xff]   ;;  %v147_v30 = vld [vmem:[#allocation11] sm:$0x1]  ;;  %vm386_vm4 = vcmask 1043459   ;;  %vm388_vm5 = vcmask 1044484   ;;  %vm390_vm6 = vcmask 1045509  }
  0x5e   :  { %469 = vmatprep.subr.bf16.mxu1 %v492_v4  ;;  %471 = vmatprep.mubr.msk.bf16.mxu1 %vm103_vm1, %v493_v5  ;;  %v771_v13 = vsub.s32 %v349_v12, %v297_v11  ;;  %v294_v34 = vpack.i.b16 %v147_v30, %v147_v30  ;;  %v298_v35 = vsub.s32 0, %v297_v11  ;;  %vm392_vm7 = vcmask 1046534   ;;  %s666_s4 = smov [#allocation12]  }
  0x5f   :  { %vm394_vm8 = vcmask 1047559   ;;  %vm397_vm9 = vcmask 64512   ;;  %s426_s29 = sshll.u32 %s666_s4, 4  ;;  %s427_s29 = int_to_ptr.vmem [resolvable:$true] %s426_s29 }
  0x60   :  { %462 = vmatpush3.bf16.msra.mxu0 %v491_v3  ;;  %v299_v44 = vrot.slane %v294_v34, %v298_v35  ;;  %s627_s27 = scalar_lea.vmem %s427_s29, 128  ;;  %p632_p13 = scmp.lt.s32.totalorder %s427_s29, %s427_s29 }
  0x61   :  { %470 = vmatpush3.bf16.msra.mxu1 %v492_v4  ;;  %p628_p12 = scmp.ne.s32.totalorder %s427_s29, %s627_s27  ;;  %p633_p0 = scmp.lt.s32.totalorder %s627_s27, %s627_s27 }
  0x63   :  { %464 = vmatmul.mubr.msk.bf16.vlgmr.msra.gmra.mrb[0].mxu0 %vm103_vm1, %v86_v6  ;;  %p634_p1 = por %p633_p0, %p632_p13 }
  0x64   :  { %472 = vmatmul.mubr.msk.bf16.vlgmr.msra.gmra.mrb[0].mxu1 %vm103_vm1, %v494_v7 }
  0x65   :  { %475 = vmatprep.mubr.msk.bf16.mxu1 %vm103_vm1, %v495_v8  ;;  %p635_p2 = pnand %p634_p1, %p628_p12 }
  0x6c   :  { %476 = vmatmul.mubr.msk.bf16.gmra.mrb[4].mxu1 %vm103_vm1, %v496_v9 }
 0x136   :  { %v141_v14 = vpop.f32.mrb[0].mxu0 }
 0x137   :  { %v465_v15 = vpop.f32.mrb[1].mxu0  ;;  %v473_v16 = vpop.f32.mrb[0].mxu1 }
 0x138   :  { %v144_v17 = vpop.f32.mrb[2].mxu0  ;;  %v271_v18 = vadd.f32 %v473_v16, %v141_v14  ;;  %v238_v19 = vpop.f32.mrb[1].mxu1 }
 0x139   :  { %v466_v20 = vpop.f32.mrb[3].mxu0  ;;  %v269_v21 = vadd.f32 %v238_v19, %v141_v14  ;;  %v474_v22 = vpop.f32.mrb[2].mxu1 }
 0x13a   :  { %v279_v23 = vpack.c.bf16 %v271_v18, %v271_v18  ;;  %v272_v24 = vadd.f32 %v474_v22, %v141_v14  ;;  %v241_v25 = vpop.f32.mrb[3].mxu1 }
 0x13b   :  { %v277_v26 = vpack.c.bf16 %v269_v21, %v269_v21  ;;  %v270_v27 = vadd.f32 %v241_v25, %v141_v14 }
 0x13c   :  { %497 = vtanh.bf16 %v279_v23  ;;  %v280_v28 = vpack.c.bf16 %v272_v24, %v272_v24 }
 0x13d   :  { %499 = vtanh.bf16 %v277_v26  ;;  %v278_v29 = vpack.c.bf16 %v270_v27, %v270_v27 }
 0x13e   :  { %501 = vtanh.bf16 %v280_v28 }
 0x13f   :  { %503 = vtanh.bf16 %v278_v29  ;;  %v477_v31 = vpop.f32.mrb[4].mxu1 }
 0x140   :  { %v275_v32 = vadd.f32 %v477_v31, %v141_v14  ;;  %v254_v33 = vpop.f32.mrb[5].mxu1 }
 0x141   :  { %v273_v36 = vadd.f32 %v254_v33, %v141_v14  ;;  %v478_v37 = vpop.f32.mrb[6].mxu1 }
 0x142   :  { %v283_v38 = vpack.c.bf16 %v275_v32, %v275_v32  ;;  %v276_v39 = vadd.f32 %v478_v37, %v141_v14  ;;  %v257_v40 = vpop.f32.mrb[7].mxu1 }
 0x143   :  { %v281_v41 = vpack.c.bf16 %v273_v36, %v273_v36  ;;  %v274_v42 = vadd.f32 %v257_v40, %v141_v14 }
 0x144   :  { %505 = vtanh.bf16 %v283_v38  ;;  %v284_v43 = vpack.c.bf16 %v276_v39, %v276_v39 }
 0x145   :  { %507 = vtanh.bf16 %v281_v41  ;;  %v282_v45 = vpack.c.bf16 %v274_v42, %v274_v42 }
 0x146   :  { %509 = vtanh.bf16 %v284_v43 }
 0x147   :  { %v498_v46 = vpop.eup %497  ;;  %511 = vtanh.bf16 %v282_v45 }
 0x148   :  { %v500_v47 = vpop.eup %499  ;;  %v302_v48 = vmul.bf16 %v498_v46, %v299_v44 }
 0x149   :  { %v502_v49 = vpop.eup %501  ;;  %v300_v50 = vmul.bf16 %v500_v47, %v299_v44 }
 0x14a   :  { %v504_v51 = vpop.eup %503  ;;  %v310_v52 = vunpack.c.l.bf16 %v302_v48  ;;  %v303_v53 = vmul.bf16 %v502_v49, %v299_v44 }
 0x14b   :  { %v308_v54 = vunpack.c.l.bf16 %v300_v50  ;;  %v301_v55 = vmul.bf16 %v504_v51, %v299_v44 }
 0x14c   :  { %v322_v56 = vsel %vm103_vm1, %v310_v52, 0.0  ;;  %v311_v57 = vunpack.c.l.bf16 %v303_v53 }
 0x14d   :  { %323 = vadd.xlane.f32.xlu1 %v322_v56  ;;  %v316_v58 = vsel %vm103_vm1, %v308_v54, 0.0  ;;  %v309_v59 = vunpack.c.l.bf16 %v301_v55 }
 0x14e   :  { %317 = vadd.xlane.f32.xlu0 %v316_v58  ;;  %v325_v62 = vsel %vm103_vm1, %v311_v57, 0.0 }
 0x14f   :  { %v506_v60 = vpop.eup %505  ;;  %v319_v0 = vsel %vm103_vm1, %v309_v59, 0.0 }
 0x150   :  { %v508_v61 = vpop.eup %507  ;;  %v306_v2 = vmul.bf16 %v506_v60, %v299_v44 }
 0x151   :  { %v510_v63 = vpop.eup %509  ;;  %326 = vadd.xlane.f32.xlu1 %v325_v62  ;;  %v304_v1 = vmul.bf16 %v508_v61, %v299_v44 }
 0x152   :  { %v512_v3 = vpop.eup %511  ;;  %320 = vadd.xlane.f32.xlu0 %v319_v0  ;;  %v307_v6 = vmul.bf16 %v510_v63, %v299_v44  ;;  %v314_v9 = vunpack.c.l.bf16 %v306_v2 }
 0x153   :  { %v312_v4 = vunpack.c.l.bf16 %v304_v1  ;;  %v305_v5 = vmul.bf16 %v512_v3, %v299_v44 }
 0x154   :  { %v315_v11 = vunpack.c.l.bf16 %v307_v6  ;;  %v334_v12 = vsel %vm103_vm1, %v314_v9, 0.0 }
 0x155   :  { %v328_v7 = vsel %vm103_vm1, %v312_v4, 0.0  ;;  %v313_v8 = vunpack.c.l.bf16 %v305_v5 }
 0x156   :  { %329 = vadd.xlane.f32.xlu0 %v328_v7  ;;  %v337_v14 = vsel %vm103_vm1, %v315_v11, 0.0 }
 0x157   :  { %v331_v10 = vsel %vm103_vm1, %v313_v8, 0.0 }
 0x158   :  { %332 = vadd.xlane.f32.xlu1 %v331_v10 }
 0x15a   :  { %335 = vadd.xlane.f32.xlu0 %v334_v12 }
 0x15c   :  { %338 = vadd.xlane.f32.xlu1 %v337_v14 }
 0x1da   :  { %v324_v15 = vpop.xlane.xlu1 %323 }
 0x1db   :  { %v318_v16 = vpop.xlane.xlu0 %317  ;;  %v361_v21 = vrot.slane %v324_v15, %v771_v13 }
 0x1dc   :  { %v353_v19 = vrot.slane %v318_v16, %v771_v13 }
 0x1de   :  { %v327_v17 = vpop.xlane.xlu1 %326 }
 0x1df   :  { %v321_v18 = vpop.xlane.xlu0 %320  ;;  %v365_v22 = vrot.slane %v327_v17, %v771_v13 }
 0x1e0   :  { %v357_v20 = vrot.slane %v321_v18, %v771_v13 }
 0x1e2   :  { %v383_v23 = vsel %vm382_vm2, %v357_v20, %v353_v19 }
 0x1e3   :  { %v385_v24 = vsel %vm384_vm3, %v361_v21, %v383_v23  ;;  %v330_v25 = vpop.xlane.xlu0 %329 }
 0x1e4   :  { %v387_v26 = vsel %vm386_vm4, %v365_v22, %v385_v24  ;;  %v369_v27 = vrot.slane %v330_v25, %v771_v13 }
 0x1e5   :  { %v333_v28 = vpop.xlane.xlu1 %332 }
 0x1e6   :  { %v389_v29 = vsel %vm388_vm5, %v369_v27, %v387_v26  ;;  %v373_v30 = vrot.slane %v333_v28, %v771_v13 }
 0x1e7   :  { %v336_v31 = vpop.xlane.xlu0 %335 }
 0x1e8   :  { %v391_v32 = vsel %vm390_vm6, %v373_v30, %v389_v29  ;;  %v377_v33 = vrot.slane %v336_v31, %v771_v13 }
 0x1e9   :  { %v339_v34 = vpop.xlane.xlu1 %338 }
 0x1ea   :  { %v393_v35 = vsel %vm392_vm7, %v377_v33, %v391_v32  ;;  %v381_v36 = vrot.slane %v339_v34, %v771_v13 }
 0x1ec   :  { %v395_v37 = vsel %vm394_vm8, %v381_v36, %v393_v35 }
 0x1ed   :  { %398 = vst.msk [vmem:[#allocation2] sm:$0xff] %vm397_vm9, %v395_v37 }
 0x1f4   :  { %v399_v38 = vld [vmem:[#allocation2] sm:$0xff] }
 0x1f5   :  { %v400_v39 = vsel %vm397_vm9, %v399_v38, -inf }
 0x1f6   :  { %v401_v40 = vrot.slane %v400_v39, 4 }
 0x1f8   :  { %v402_v41 = vmax.f32 %v400_v39, %v401_v40 }
 0x1fa   :  { %v403_v42 = vrot.slane %v402_v41, 2 }
 0x1fc   :  { %v404_v43 = vmax.f32 %v402_v41, %v403_v42 }
 0x1fe   :  { %v405_v44 = vrot.slane %v404_v43, 1 }
 0x200   :  { %v406_v45 = vmax.f32 %v404_v43, %v405_v44 }
 0x202   :  { %v407_v46 = vsub.f32 %v399_v38, %v406_v45 }
 0x204   :  { %v408_v47 = vmul.f32 1.442695, %v407_v46 }
 0x206   :  { %513 = vpow2.f32 %v408_v47 }
 0x210   :  { %v514_v48 = vpop.eup %513 }
 0x211   :  { %v410_v49 = vsel %vm397_vm9, %v514_v48, 0.0 }
 0x212   :  { %v411_v13 = vrot.slane %v410_v49, 4 }
 0x214   :  { %v412_v50 = vadd.f32 %v411_v13, %v410_v49 }
 0x216   :  { %v413_v51 = vrot.slane %v412_v50, 2 }
 0x218   :  { %v414_v52 = vadd.f32 %v413_v51, %v412_v50 }
 0x21a   :  { %v415_v53 = vrot.slane %v414_v52, 1 }
 0x21c   :  { %v416_v54 = vadd.f32 %v415_v53, %v414_v52 }
 0x21e   :  { %515 = vrcp.f32 %v416_v54 }
 0x228   :  { %v516_v55 = vpop.eup %515 }
 0x229   :  { %v418_v56 = vmul.f32 %v516_v55, %v514_v48 }
 0x22b   :  { %419 = vst.msk [vmem:[#allocation12] sm:$0xff] %vm397_vm9, %v418_v56 }
 0x22c   :  { %638 = shalt.err (!%p635_p2)
}
 0x22d   :  { %s639_s6 = scalar_lea.hbm %s810_s5, 128 }
 0x22e   :  { %p640_p3 = scmp.ne.s32.totalorder %s810_s5, %s639_s6  ;;  %p643_p4 = scmp.lt.u32.totalorder %s639_s6, %s810_s5 }
 0x230   :  { %p645_p5 = pnand %p643_p4, %p640_p3 }
 0x232   :  { %648 = shalt.err (!%p645_p5)
}
 0x233   :  { %429 = dma.vmem_to_hbm [thread:$0]  %s427_s29, 128, %s810_s5, [#allocation5]  }
 0x234   :  { %655 = dma.done.wait [#allocation5], 128  }
 0x235   :  { %656 = vsyncadd [#allocation5], 4294967168 }
 0x236   :  { %433 = vsyncpa [#allocation4], 1 }
 0x237   :  { %434 = vsyncpa [#allocation7], 1 }
 0x238   :  { %435 = vsyncpa [#allocation10], 1 }
 0x239   :  { %436 = vsyncpa [#allocation5], 1 }

</bundles_post_ra>
